<compile_context>
chip_gen: v5e
topology: v5e:2x2
jax: 0.10.0
libtpu: 0.0.40
codegen_flags: <defaults>
</compile_context>

<pallas_src>
import functools

import jax
import jax.numpy as jnp
from jax.experimental import pallas as pl
from jax.experimental.pallas import tpu as pltpu


def _projection_decoder_kernel(lat_ref, wt_ref, b_ref, o_ref, acc_ref, *, inv_m):
    """Streamed mean over the latent axis + final Linear projection.

    Grid = (batch blocks [parallel], M blocks [arbitrary / reduction]).
    acc_ref is a persistent (block_b, G, D) f32 accumulator; steady-state work
    is only vld + VPU adds under the DMA, so the kernel stays HBM-bound.
    """
    m = pl.program_id(1)

    @pl.when(m == 0)
    def _():
        acc_ref[...] = jnp.zeros_like(acc_ref)

    x = lat_ref[...].astype(jnp.float32)                  # (bb, bm, D)
    bb, bm, d = x.shape
    g = acc_ref.shape[1]
    # Split the sublane (second-to-last) dim into groups of `g`: summing over
    # the group axis is pure vreg-wise VPU adds, no per-step XLU reduce.
    acc_ref[...] += x.reshape(bb, bm // g, g, d).sum(axis=1)

    @pl.when(m == pl.num_programs(1) - 1)
    def _():
        mean = acc_ref[...].sum(axis=1) * inv_m           # one G->1 sublane reduce, f32
        # Weight pre-transposed / pre-cast in the wrapper -> plain NN matmul on
        # the MXU with an f32 accumulator; bias add in f32.
        logits = jnp.dot(mean.astype(wt_ref.dtype), wt_ref[...],
                         preferred_element_type=jnp.float32) + b_ref[...]
        o_ref[...] = logits.astype(o_ref.dtype)


def _vmem_capacity_bytes():
    """Physical VMEM per TensorCore; safe fallback = 64 MiB (v7x, the smallest)."""
    try:
        cap = getattr(pltpu.get_tpu_info(), "vmem_capacity_bytes", None)
        if cap:
            return int(cap)
    except Exception:
        pass
    return 64 * 1024 * 1024


def _pick_block_b(B):
    """Batch is an independent ('parallel') grid axis so v7x's two TensorCores
    can each take half of it.  Output block is (block_b, C), so block_b must be
    a multiple of 8 or equal to B."""
    if B >= 16 and B % 16 == 0:
        return B // 2
    return B


def _pick_block_m(M, D, block_b, lat_bytes, budget, fixed):
    """Largest pack-aligned divisor of M whose double-buffered latents block
    fits the VMEM budget."""
    pack = max(8, 32 // max(1, lat_bytes))        # 8 f32, 16 bf16, 32 int8/fp8
    per_row = 2 * block_b * D * lat_bytes         # double-buffered bytes per M row
    avail = budget - fixed
    if avail <= per_row * pack:
        bm_cap = pack                             # minimum legal streaming tile
    else:
        bm_cap = (avail // per_row) // pack * pack
    if bm_cap >= M:
        return M
    for cand in range(int(bm_cap), pack - 1, -pack):
        if M % cand == 0:
            return cand
    return M   # no pack-aligned divisor (odd / prime M): single full block


def projection_decoder(latents, weight, bias, *, query=None, q_mask=None):
    """Pallas forward of ProjectionDecoder: Linear(latents.mean(axis=1)).

    latents: (B, M, D)
    weight:  (C, D)  -- PyTorch nn.Linear layout
    bias:    (C,)
    query / q_mask: accepted for signature parity, unused by the module.
    """
    del query, q_mask  # Module's forward ignores them.

    B, M, D = latents.shape
    C, D_w = weight.shape
    assert D_w == D, "weight in_features must match latent_dim"

    lat_bytes = jnp.dtype(latents.dtype).itemsize
    # One-time layout plumbing (folds under jit): pre-transpose the weight so
    # the kernel issues a plain NN matmul (no in-kernel vxpose) and cast it to
    # the latent dtype so bf16 inputs take the native bf16 MXU path.
    w_t = weight.T.astype(latents.dtype)                  # (D, C)
    b2 = bias.astype(jnp.float32).reshape(1, C)           # bias add stays f32
    w_bytes = jnp.dtype(w_t.dtype).itemsize
    out_bytes = lat_bytes

    block_b = _pick_block_b(B)
    num_b_blocks = B // block_b

    # Generation-aware VMEM budgeting: ~48 MiB working set on v7x (64 MiB VMEM),
    # ~96 MiB on v5e/v6e (128 MiB VMEM).
    vmem_cap = _vmem_capacity_bytes()
    budget = int(vmem_cap * 0.75)
    fixed = (2 * D * C * w_bytes             # W.T (double-buffered by default)
             + 2 * C * 4                     # bias
             + block_b * 8 * D * 4           # f32 accumulator scratch
             + 2 * block_b * C * out_bytes)  # output block
    block_m = _pick_block_m(M, D, block_b, lat_bytes, budget, fixed)
    num_m_blocks = M // block_m

    # Per-step reduction stays on the VPU when the M tile is sublane-aligned.
    g = 8 if block_m % 8 == 0 else 1

    kernel = functools.partial(_projection_decoder_kernel, inv_m=1.0 / M)

    return pl.pallas_call(
        kernel,
        out_shape=jax.ShapeDtypeStruct((B, C), latents.dtype),
        grid=(num_b_blocks, num_m_blocks),
        in_specs=[
            pl.BlockSpec((block_b, block_m, D), lambda b, m: (b, m, 0)),  # latents stream
            pl.BlockSpec((D, C), lambda b, m: (0, 0)),                    # W.T (loop-invariant)
            pl.BlockSpec((1, C), lambda b, m: (0, 0)),                    # bias
        ],
        out_specs=pl.BlockSpec((block_b, C), lambda b, m: (b, 0)),        # resident over m
        scratch_shapes=[pltpu.VMEM((block_b, g, D), jnp.float32)],        # sum accumulator
        compiler_params=pltpu.CompilerParams(
            dimension_semantics=("parallel", "arbitrary"),  # batch parallel, M reduction
            vmem_limit_bytes=int(min(vmem_cap,
                                     max(32 * 1024 * 1024, vmem_cap * 0.85)))),
    )(latents, w_t, b2)


def reference_projection_decoder(latents, weight, bias):
    """Plain JAX re-implementation of the PyTorch forward."""
    return latents.mean(axis=1) @ weight.T + bias


if __name__ == "__main__":
    # Small shapes consistent with the module:
    #   latents: (batch, num_latents, latent_dim), query: (batch, q_len, q_dim)
    B, M, N = 2, 8, 4
    latent_dim, q_dim, num_classes = 32, 16, 16

    key = jax.random.PRNGKey(0)
    k0, k1, k2, k3 = jax.random.split(key, 4)
    latents = jax.random.normal(k0, (B, M, latent_dim), jnp.float32)
    query = jax.random.normal(k1, (B, N, q_dim), jnp.float32)   # unused by module
    weight = 0.05 * jax.random.normal(k2, (num_classes, latent_dim), jnp.float32)
    bias = 0.01 * jax.random.normal(k3, (num_classes,), jnp.float32)

    # jit so the one-time weight transpose/cast folds into the same compiled
    # program as the kernel call (no per-call re-materialization).
    fwd = jax.jit(projection_decoder)
    out = jax.block_until_ready(fwd(latents, weight, bias, query=query, q_mask=None))

    ref = reference_projection_decoder(latents, weight, bias)
    assert out.shape == (B, num_classes)
    assert jnp.allclose(out, ref, atol=1e-5, rtol=1e-5), "mismatch vs reference"

    print("KERNEL_OK")
</pallas_src>

<mosaic_0001>
module attributes {stable_mosaic.version = 11 : i64} {
  func.func @_projection_decoder_kernel(%arg0: i32, %arg1: i32, %arg2: memref<2x8x32xf32, #tpu.memory_space<vmem>>, %arg3: memref<32x16xf32, #tpu.memory_space<vmem>>, %arg4: memref<1x16xf32, #tpu.memory_space<vmem>>, %arg5: memref<2x16xf32, #tpu.memory_space<vmem>>, %arg6: memref<2x8x32xf32, #tpu.memory_space<vmem>>) attributes {dimension_semantics = [#tpu.dimension_semantics<parallel>, #tpu.dimension_semantics<arbitrary>], iteration_bounds = array<i64: 1, 1>, scalar_prefetch = 0 : i64, scratch_operands = 1 : i64, tpu.core_type = #tpu.core_type<tc>, window_params = [{transform_indices = @transform_0, window_bounds = array<i64: 2, 8, 32>}, {pipeline_mode = #tpu.pipeline_mode<synchronous>, transform_indices = @transform_1, window_bounds = array<i64: 32, 16>}, {pipeline_mode = #tpu.pipeline_mode<synchronous>, transform_indices = @transform_2, window_bounds = array<i64: 1, 16>}, {transform_indices = @transform_3, window_bounds = array<i64: 2, 16>}]} {
    %c0_i32 = arith.constant 0 : i32
    %0 = arith.cmpi eq, %arg1, %c0_i32 : i32
    %1 = arith.extui %0 : i1 to i32
    %c0_i32_0 = arith.constant 0 : i32
    %2 = arith.cmpi ne, %1, %c0_i32_0 : i32
    scf.if %2 {
      %cst_11 = arith.constant 0.000000e+00 : f32
      %12 = vector.broadcast %cst_11 : f32 to vector<2x8x32xf32>
      %c0_12 = arith.constant 0 : index
      %c0_13 = arith.constant 0 : index
      %c0_14 = arith.constant 0 : index
      %13 = vector.load %arg6[%c0_12, %c0_13, %c0_14] : memref<2x8x32xf32, #tpu.memory_space<vmem>>, vector<2x8x32xf32>
      tpu.vector_store %arg6[%c0_12, %c0_13, %c0_14], %12 {strides = array<i32>} : memref<2x8x32xf32, #tpu.memory_space<vmem>>, vector<2x8x32xf32>,
    } else {
    }
    %c0 = arith.constant 0 : index
    %c0_1 = arith.constant 0 : index
    %c0_2 = arith.constant 0 : index
    %3 = vector.load %arg2[%c0, %c0_1, %c0_2] : memref<2x8x32xf32, #tpu.memory_space<vmem>>, vector<2x8x32xf32>
    %c0_3 = arith.constant 0 : index
    %c0_4 = arith.constant 0 : index
    %c0_5 = arith.constant 0 : index
    %4 = vector.load %arg6[%c0_3, %c0_4, %c0_5] : memref<2x8x32xf32, #tpu.memory_space<vmem>>, vector<2x8x32xf32>
    %5 = vector.shape_cast %3 : vector<2x8x32xf32> to vector<2x1x8x32xf32>
    %cst = arith.constant dense<0.000000e+00> : vector<2x8x32xf32>
    %6 = vector.multi_reduction <add>, %5, %cst [1] : vector<2x1x8x32xf32> to vector<2x8x32xf32>
    %7 = arith.addf %4, %6 : vector<2x8x32xf32>
    %c0_6 = arith.constant 0 : index
    %c0_7 = arith.constant 0 : index
    %c0_8 = arith.constant 0 : index
    %8 = vector.load %arg6[%c0_6, %c0_7, %c0_8] : memref<2x8x32xf32, #tpu.memory_space<vmem>>, vector<2x8x32xf32>
    tpu.vector_store %arg6[%c0_6, %c0_7, %c0_8], %7 {strides = array<i32>} : memref<2x8x32xf32, #tpu.memory_space<vmem>>, vector<2x8x32xf32>,
    %c0_i32_9 = arith.constant 0 : i32
    %9 = arith.cmpi eq, %arg1, %c0_i32_9 : i32
    %10 = arith.extui %9 : i1 to i32
    %c0_i32_10 = arith.constant 0 : i32
    %11 = arith.cmpi ne, %10, %c0_i32_10 : i32
    scf.if %11 {
      %c0_11 = arith.constant 0 : index
      %c0_12 = arith.constant 0 : index
      %c0_13 = arith.constant 0 : index
      %12 = vector.load %arg6[%c0_11, %c0_12, %c0_13] : memref<2x8x32xf32, #tpu.memory_space<vmem>>, vector<2x8x32xf32>
      %cst_14 = arith.constant dense<0.000000e+00> : vector<2x32xf32>
      %13 = vector.multi_reduction <add>, %12, %cst_14 [1] : vector<2x8x32xf32> to vector<2x32xf32>
      %cst_15 = arith.constant 1.250000e-01 : f32
      %14 = vector.broadcast %cst_15 : f32 to vector<2x32xf32>
      %15 = arith.mulf %13, %14 : vector<2x32xf32>
      %c0_16 = arith.constant 0 : index
      %c0_17 = arith.constant 0 : index
      %16 = vector.load %arg3[%c0_16, %c0_17] : memref<32x16xf32, #tpu.memory_space<vmem>>, vector<32x16xf32>
      %cst_18 = arith.constant dense<0.000000e+00> : vector<2x16xf32>
      %17 = tpu.matmul %15, %16, %cst_18 {dimension_numbers = #tpu.dot_dimension_numbers<[1], [0], [0], [1], [0, 0, 1, 1], [], []>} : vector<2x32xf32>, vector<32x16xf32>, vector<2x16xf32> -> vector<2x16xf32>
      %c0_19 = arith.constant 0 : index
      %c0_20 = arith.constant 0 : index
      %18 = vector.load %arg4[%c0_19, %c0_20] : memref<1x16xf32, #tpu.memory_space<vmem>>, vector<1x16xf32>
      %19 = vector.broadcast %18 : vector<1x16xf32> to vector<2x16xf32>
      %20 = arith.addf %17, %19 : vector<2x16xf32>
      %c0_21 = arith.constant 0 : index
      %c0_22 = arith.constant 0 : index
      %21 = vector.load %arg5[%c0_21, %c0_22] : memref<2x16xf32, #tpu.memory_space<vmem>>, vector<2x16xf32>
      tpu.vector_store %arg5[%c0_21, %c0_22], %20 {strides = array<i32>} : memref<2x16xf32, #tpu.memory_space<vmem>>, vector<2x16xf32>,
    } else {
    }
    return
  }
  func.func @transform_0(%arg0: i32, %arg1: i32) -> (i32, i32, i32) {
    %c0_i32 = arith.constant 0 : i32
    %c0_i32_0 = arith.constant 0 : i32
    return %arg0, %arg1, %c0_i32 : i32, i32, i32
  }
  func.func @transform_1(%arg0: i32, %arg1: i32) -> (i32, i32) {
    %c0_i32 = arith.constant 0 : i32
    %c0_i32_0 = arith.constant 0 : i32
    %c0_i32_1 = arith.constant 0 : i32
    return %c0_i32, %c0_i32_0 : i32, i32
  }
  func.func @transform_2(%arg0: i32, %arg1: i32) -> (i32, i32) {
    %c0_i32 = arith.constant 0 : i32
    %c0_i32_0 = arith.constant 0 : i32
    %c0_i32_1 = arith.constant 0 : i32
    return %c0_i32, %c0_i32_0 : i32, i32
  }
  func.func @transform_3(%arg0: i32, %arg1: i32) -> (i32, i32) {
    %c0_i32 = arith.constant 0 : i32
    %c0_i32_0 = arith.constant 0 : i32
    return %arg0, %c0_i32 : i32, i32
  }
}

</mosaic_0001>

<bundles_post_ra>
// kernel: projection_decoder.1
= control target key start
LH: loop header
LB: loop body
LE: loop exit
PB: predicated region body
PF: predicated region fallthrough
CT: control target
= control target key end

     0   :  { %vm19_vm0 = vcmask 261120   ;;  %v136_v2 = vmov 0.0   ;;  %s189_s0 = inlined_call_operand.vmem [shape: f32[2,8,32], index: 0, kind: input, shape index: {}]   ;;  %s190_s1 = inlined_call_operand.vmem [shape: f32[32,16], index: 1, kind: input, shape index: {}]   ;;  %s191_s2 = inlined_call_operand.vmem [shape: f32[1,16], index: 2, kind: input, shape index: {}]   ;;  %s192_s3 = inlined_call_operand.hbm [shape: f32[2,16], index: 3, kind: output, shape index: {}]  }
   0x1   :  { %v57_v0 = vld [vmem:[%s190_s1 + $0x18] sm:$0xff]  ;;  %v56_v1 = vld [vmem:[%s190_s1 + $0x10] sm:$0xff]  ;;  %20 = vst.msk [vmem:[#allocation2] sm:$0xff] %vm19_vm0, %v136_v2  ;;  %v55_v3 = vld [vmem:[%s190_s1 + $0x8] sm:$0xff] }
   0x2   :  { %80 = vmatpush.msra.mxu0 %v57_v0  ;;  %21 = vst.msk [vmem:[#allocation2 + $0x8] sm:$0xff] %vm19_vm0, %v136_v2 }
   0x3   :  { %8 = vsyncpa [#allocation4], 0  ;;  %v54_v4 = vld [vmem:[%s190_s1] sm:$0xff]  ;;  %v23_v6 = vld [vmem:[%s189_s0 + $0x8] sm:$0xff]  ;;  %vm64_vm1 = vcmask 1041409   ;;  %s137_s24 = smov [#allocation3]  }
   0x4   :  { %81 = vmatpush.msra.mxu0 %v56_v1  ;;  %v22_v5 = vld [vmem:[%s189_s0] sm:$0xff]  ;;  %s95_s25 = sshll.u32 %s137_s24, 4  ;;  %s97_s28 = sshll.u32 %s192_s3, 4  ;;  %vm88_vm2 = vcmask 123904   ;;  %s96_s25 = int_to_ptr.vmem [resolvable:$true] %s95_s25  ;;  %s98_s28 = int_to_ptr.hbm [resolvable:$true] %s97_s28 }
   0x5   :  { %v109_v30 = vld [vmem:[%s191_s2] ss:$0 sm:$0xff] }
   0x6   :  { %82 = vmatpush.msra.mxu0 %v55_v3 }
   0x8   :  { %83 = vmatpush.msra.mxu0 %v54_v4  ;;  %v24_v7 = vld [vmem:[#allocation2] sm:$0xff] }
   0x9   :  { %v25_v8 = vld [vmem:[#allocation2 + $0x8] sm:$0xff]  ;;  %v28_v9 = vadd.f32 %v24_v7, %v22_v5 }
   0xa   :  { %v29_v10 = vadd.f32 %v25_v8, %v23_v6 }
   0xb   :  { %31 = vst.msk [vmem:[#allocation2] sm:$0xff] %vm19_vm0, %v28_v9 }
   0xc   :  { %32 = vst.msk [vmem:[#allocation2 + $0x8] sm:$0xff] %vm19_vm0, %v29_v10 }
  0x12   :  { %v36_v11 = vld [vmem:[#allocation2] sm:$0xff] }
  0x13   :  { %v37_v12 = vld [vmem:[#allocation2 + $0x8] sm:$0xff]  ;;  %v38_v13 = vsel %vm19_vm0, %v36_v11, 0.0 }
  0x14   :  { %v39_v14 = vrot.slane %v38_v13, 4  ;;  %v45_v15 = vsel %vm19_vm0, %v37_v12, 0.0 }
  0x15   :  { %v46_v16 = vrot.slane %v45_v15, 4 }
  0x16   :  { %v40_v17 = vadd.f32 %v39_v14, %v38_v13 }
  0x17   :  { %v47_v18 = vadd.f32 %v46_v16, %v45_v15 }
  0x18   :  { %v41_v19 = vrot.slane %v40_v17, 2 }
  0x19   :  { %v48_v20 = vrot.slane %v47_v18, 2 }
  0x1a   :  { %v42_v21 = vadd.f32 %v41_v19, %v40_v17 }
  0x1b   :  { %v49_v22 = vadd.f32 %v48_v20, %v47_v18 }
  0x1c   :  { %v43_v23 = vrot.slane %v42_v21, 1 }
  0x1d   :  { %v50_v24 = vrot.slane %v49_v22, 1 }
  0x1e   :  { %v44_v25 = vadd.f32 %v43_v23, %v42_v21 }
  0x1f   :  { %v51_v26 = vadd.f32 %v50_v24, %v49_v22 }
  0x20   :  { %v52_v27 = vmul.f32 0.125, %v44_v25 }
  0x21   :  { %v53_v28 = vmul.f32 0.125, %v51_v26 }
  0x23   :  { %v65_v29 = vsel %vm64_vm1, %v53_v28, %v52_v27 }
  0x24   :  { %106 = vmatmul.msk.f32.vlgmr.msra.gmra.mxu0 %vm19_vm0, %v65_v29 }
  0xa1   :  { %v85_v31 = vpop.f32.mrf.mxu0 }
  0xa2   :  { %v86_v32 = vadd.f32 %v109_v30, %v85_v31 }
  0xa4   :  { %89 = vst.msk [vmem:[#allocation3] sm:$0x3] %vm88_vm2, %v86_v32 }
  0xa5   :  { %100 = dma.vmem_to_hbm [thread:$0]  %s96_s25, 32, %s98_s28, [#allocation4]  }
  0xa6   :  { %134 = dma.done.wait [#allocation4], 32  }
  0xa7   :  { %135 = vsyncadd [#allocation4], 4294967264 }
  0xa8   :  { %105 = vsyncpa [#allocation4], 1 }

</bundles_post_ra>
